<compile_context>
chip_gen: v6e
topology: v6e:2x2x1
jax: 0.10.0
libtpu: 0.0.40
codegen_flags: <defaults>
</compile_context>

<pallas_src>
import functools

import numpy as np

import jax
import jax.numpy as jnp
from jax.experimental import pallas as pl
from jax.experimental.pallas import tpu as pltpu


# --------------------------------------------------------------------------- kernel

def _conv_rows(src_ref, w_ref, rows, kh, merged):
    """3x3-in-H conv of a row slab as MXU matmuls.

    src_ref : (rows + kh - 1, K) VMEM slab, halo rows already zeroed (structural H padding)
    w_ref   : (kh*K, N) if merged else (kh, K, N) block-Toeplitz weights (BN scale folded in)
    returns : (rows, N) float32 accumulator
    """
    if merged:
        lhs = jnp.concatenate([src_ref[dy:dy + rows, :] for dy in range(kh)], axis=1)
        return jnp.dot(lhs, w_ref[...], preferred_element_type=jnp.float32)
    acc = jnp.dot(src_ref[0:rows, :], w_ref[0], preferred_element_type=jnp.float32)
    for dy in range(1, kh):
        acc = acc + jnp.dot(src_ref[dy:dy + rows, :], w_ref[dy],
                            preferred_element_type=jnp.float32)
    return acc


def fused_convblock_kernel(x_cur_ref, x_top_ref, x_bot_ref,
                           t1_ref, b1_ref, t2_ref, b2_ref,
                           o_ref, xpad_ref, mid_ref,
                           *, kh, merge_k1, merge_k2):
    """One (batch, row-tile) step of the fused ConvBlock.

    x_cur_ref : (1, TH, W*Cin)     current row tile, (W,Cin) collapsed to lanes
    x_top_ref : (1, 8, W*Cin)      last 8 rows of the previous tile (clamped at t==0)
    x_bot_ref : (1, 8, W*Cin)      first 8 rows of the next tile (clamped at t==nt-1)
    t1_ref    : stage-1 Toeplitz weights, (kh*K1, N1) or (kh, K1, N1); BN scale folded in
    b1_ref    : (1, N1)            stage-1 folded bias (f32)
    t2_ref    : stage-2 Toeplitz weights, (kh*N1, N2) or (kh, N1, N2); BN scale folded in
    b2_ref    : (1, N2)            stage-2 folded bias (f32)
    o_ref     : (1, TH, N2)        lane-dense output tile
    xpad_ref  : (TH+4, W*Cin)      scratch: input rows + 2-row halo each side
    mid_ref   : (TH+2, N1)         scratch: stage-1 activation + 1-row halo (never hits HBM)
    """
    t = pl.program_id(1)
    nt = pl.num_programs(1)
    th = x_cur_ref.shape[1]
    halo = x_top_ref.shape[1]
    kin = x_cur_ref.shape[2]
    n1 = mid_ref.shape[1]

    # ---- assemble the haloed input slab (rows outside the image are zero = conv H padding) ----
    xpad_ref[2:2 + th, :] = x_cur_ref[0]

    @pl.when(t > 0)
    def _():
        xpad_ref[0:2, :] = x_top_ref[0, halo - 2:halo, :]

    @pl.when(t == 0)
    def _():
        xpad_ref[0:2, :] = jnp.zeros((2, kin), xpad_ref.dtype)

    @pl.when(t < nt - 1)
    def _():
        xpad_ref[2 + th:4 + th, :] = x_bot_ref[0, 0:2, :]

    @pl.when(t == nt - 1)
    def _():
        xpad_ref[2 + th:4 + th, :] = jnp.zeros((2, kin), xpad_ref.dtype)

    # ---- stage 1: conv3x3 + folded BN + ReLU (Dropout2d is identity in eval) ----
    acc1 = _conv_rows(xpad_ref, t1_ref, th + 2, kh, merge_k1)
    mid = jnp.maximum(acc1 + b1_ref[...], 0.0)
    mid_ref[...] = mid.astype(mid_ref.dtype)

    # rows of `mid` outside the image provide stage-2's structural zero H-padding
    @pl.when(t == 0)
    def _():
        mid_ref[0:1, :] = jnp.zeros((1, n1), mid_ref.dtype)

    @pl.when(t == nt - 1)
    def _():
        mid_ref[th + 1:th + 2, :] = jnp.zeros((1, n1), mid_ref.dtype)

    # ---- stage 2: conv3x3 + folded BN + ReLU ----
    acc2 = _conv_rows(mid_ref, t2_ref, th, kh, merge_k2)
    out = jnp.maximum(acc2 + b2_ref[...], 0.0)
    o_ref[...] = out[None].astype(o_ref.dtype)


# ----------------------------------------------------------------- wrapper helpers

def _fold_bn(conv_bias, gamma, beta, running_mean, running_var, eps=1e-5):
    """Fold BatchNorm2d (inference, running stats) + conv bias into per-channel scale/bias."""
    scale = gamma * jax.lax.rsqrt(running_var + eps)
    bias = (conv_bias - running_mean) * scale + beta
    return scale, bias


def _toeplitz(w_hwio, scale, width):
    """Per-dy block-Toeplitz matrices (BN scale folded in), W-padding handled structurally.

    Maps a flattened input row (width*cin lanes) to a flattened output row (width*cout lanes);
    out-of-range dx taps are simply absent (= the conv's zero W-padding).
    Returns shape (kh, width*cin, width*cout).
    """
    kh, kw, cin, cout = w_hwio.shape
    ws = (w_hwio * scale).astype(jnp.float32)              # scale broadcasts over cout
    mask = np.zeros((kw, width, width), np.float32)        # mask[dx, w_in, q]
    for dx in range(kw):
        for q in range(width):
            w_in = q + dx - 1                               # input column feeding tap dx (pad=1)
            if 0 <= w_in < width:
                mask[dx, w_in, q] = 1.0
    t = jnp.einsum("dwq,hdio->hwiqo", jnp.asarray(mask), ws)
    return t.reshape(kh, width * cin, width * cout)


def convblock_forward(x_nhwc, params, row_tile=256, matmul_dtype=jnp.float32):
    """ConvBlock forward (inference). x_nhwc: (N, H, W, Cin) -> (N, H, W, Cout)."""
    n, h, w, cin = x_nhwc.shape
    kh, kw, _, cout = params["w1"].shape
    assert (kh, kw) == (3, 3), "kernel is specialized to 3x3 convolutions"
    assert h % 8 == 0, "H must be a multiple of 8 (sublane / halo-block granularity)"

    # Large row tiles: feed the MXU big M and keep grid-step overhead amortized.
    th = row_tile if (h % row_tile == 0 and h > row_tile) else h
    assert th % 8 == 0
    nt = h // th
    th8, h8 = th // 8, h // 8

    s1, b1 = _fold_bn(params["b1"], params["g1"], params["beta1"],
                      params["rm1"], params["rv1"])
    s2, b2 = _fold_bn(params["b2"], params["g2"], params["beta2"],
                      params["rm2"], params["rv2"])

    kin = w * cin                    # stage-1 per-dy K
    n1 = w * cout                    # stage-1 N == stage-2 per-dy K (lane-perfect, no pad cols)
    n2 = w * cout                    # stage-2 N

    t1 = _toeplitz(params["w1"], s1, w)          # (3, kin, n1)
    t2 = _toeplitz(params["w2"], s2, w)          # (3, n1,  n2)

    # Merge K over the 3 dy taps when the pieces are whole 128-lane vregs (v6e/v7x MXU win).
    merge1 = (kin % 128 == 0)
    merge2 = (n1 % 128 == 0)
    if merge1:
        t1 = t1.reshape(kh * kin, n1)
    if merge2:
        t2 = t2.reshape(kh * n1, n2)
    t1 = t1.astype(matmul_dtype)
    t2 = t2.astype(matmul_dtype)

    b1_row = jnp.broadcast_to(b1.astype(jnp.float32), (w, cout)).reshape(1, n1)
    b2_row = jnp.broadcast_to(b2.astype(jnp.float32), (w, cout)).reshape(1, n2)

    xf = x_nhwc.reshape(n, h, kin).astype(matmul_dtype)     # lane-dense (W,Cin) collapse

    kernel = functools.partial(fused_convblock_kernel, kh=kh,
                               merge_k1=merge1, merge_k2=merge2)

    t1_spec = (pl.BlockSpec((kh * kin, n1), lambda b, t: (0, 0)) if merge1
               else pl.BlockSpec((kh, kin, n1), lambda b, t: (0, 0, 0)))
    t2_spec = (pl.BlockSpec((kh * n1, n2), lambda b, t: (0, 0)) if merge2
               else pl.BlockSpec((kh, n1, n2), lambda b, t: (0, 0, 0)))

    out = pl.pallas_call(
        kernel,
        out_shape=jax.ShapeDtypeStruct((n, h, n2), x_nhwc.dtype),
        grid=(n, nt),
        in_specs=[
            # current row tile
            pl.BlockSpec((1, th, kin), lambda b, t: (b, t, 0)),
            # 8-row halo blocks from the neighbouring tiles (only 2 rows used; clamped at edges
            # and zero-masked in-kernel) -> input DMA ~ (1 + 16/TH)x instead of 3x.
            pl.BlockSpec((1, 8, kin), lambda b, t: (b, jnp.maximum(t * th8 - 1, 0), 0)),
            pl.BlockSpec((1, 8, kin), lambda b, t: (b, jnp.minimum((t + 1) * th8, h8 - 1), 0)),
            # constant index maps -> weights/biases DMA'd to VMEM once and reused.
            # (For production W*C sizes: W-tile these and use pipeline_mode=pl.Buffered(1).)
            t1_spec,
            pl.BlockSpec((1, n1), lambda b, t: (0, 0)),
            t2_spec,
            pl.BlockSpec((1, n2), lambda b, t: (0, 0)),
        ],
        out_specs=pl.BlockSpec((1, th, n2), lambda b, t: (b, t, 0)),
        scratch_shapes=[
            pltpu.VMEM((th + 4, kin), matmul_dtype),     # haloed input slab
            pltpu.VMEM((th + 2, n1), matmul_dtype),      # stage-1 activation (never hits HBM)
        ],
        compiler_params=pltpu.CompilerParams(
            dimension_semantics=("parallel", "parallel"),  # disjoint output tiles -> megacore OK
            vmem_limit_bytes=32 * 1024 * 1024,
        ),
    )(xf, xf, xf, t1, b1_row, t2, b2_row)

    return out.reshape(n, h, w, cout)


def in_conv_forward(x_nchw, params, matmul_dtype=jnp.float32):
    """InConv.forward: NCHW in, NCHW out (PyTorch convention).

    The two transposes exist only to honour the NCHW interface; keep the surrounding model
    NHWC end-to-end to remove them (they are plain XLA relayout passes over HBM).
    """
    x = jnp.transpose(x_nchw, (0, 2, 3, 1))      # NCHW -> NHWC
    y = convblock_forward(x, params, matmul_dtype=matmul_dtype)
    return jnp.transpose(y, (0, 3, 1, 2))        # NHWC -> NCHW


# --------------------------------------------------------------- params & reference

def init_params(key, in_channels, out_channels, kernel_size=(3, 3)):
    """Deterministic synthetic parameters (same shapes as the PyTorch module)."""
    kh, kw = kernel_size
    ks = jax.random.split(key, 12)

    def conv_w(k, cin, cout):
        fan_in = cin * kh * kw
        return jax.random.normal(k, (kh, kw, cin, cout), jnp.float32) / jnp.sqrt(fan_in)

    p = {}
    p["w1"] = conv_w(ks[0], in_channels, out_channels)
    p["b1"] = 0.1 * jax.random.normal(ks[1], (out_channels,), jnp.float32)
    p["g1"] = 1.0 + 0.1 * jax.random.normal(ks[2], (out_channels,), jnp.float32)
    p["beta1"] = 0.1 * jax.random.normal(ks[3], (out_channels,), jnp.float32)
    p["rm1"] = 0.1 * jax.random.normal(ks[4], (out_channels,), jnp.float32)
    p["rv1"] = jnp.abs(jax.random.normal(ks[5], (out_channels,), jnp.float32)) + 0.5
    p["w2"] = conv_w(ks[6], out_channels, out_channels)
    p["b2"] = 0.1 * jax.random.normal(ks[7], (out_channels,), jnp.float32)
    p["g2"] = 1.0 + 0.1 * jax.random.normal(ks[8], (out_channels,), jnp.float32)
    p["beta2"] = 0.1 * jax.random.normal(ks[9], (out_channels,), jnp.float32)
    p["rm2"] = 0.1 * jax.random.normal(ks[10], (out_channels,), jnp.float32)
    p["rv2"] = jnp.abs(jax.random.normal(ks[11], (out_channels,), jnp.float32)) + 0.5
    return p


def _reference_forward(x_nchw, params, padding=(1, 1)):
    """Pure-JAX reference (lax conv, f32) for correctness checking."""
    x = jnp.transpose(x_nchw, (0, 2, 3, 1))
    dn = jax.lax.conv_dimension_numbers(x.shape, params["w1"].shape,
                                        ("NHWC", "HWIO", "NHWC"))

    def stage(x, w, b, g, beta, rm, rv):
        y = jax.lax.conv_general_dilated(
            x, w, (1, 1),
            [(padding[0], padding[0]), (padding[1], padding[1])],
            dimension_numbers=dn,
            precision=jax.lax.Precision.HIGHEST) + b
        y = (y - rm) / jnp.sqrt(rv + 1e-5) * g + beta
        return jnp.maximum(y, 0.0)

    x = stage(x, params["w1"], params["b1"], params["g1"], params["beta1"],
              params["rm1"], params["rv1"])
    x = stage(x, params["w2"], params["b2"], params["g2"], params["beta2"],
              params["rm2"], params["rv2"])
    return jnp.transpose(x, (0, 3, 1, 2))


if __name__ == "__main__":
    key = jax.random.PRNGKey(0)
    k_x, k_p = jax.random.split(key)

    N, Cin, H, W = 2, 4, 16, 16
    Cout = 8
    x = jax.random.normal(k_x, (N, Cin, H, W), jnp.float32)   # NCHW like PyTorch
    params = init_params(k_p, Cin, Cout)

    ref = jax.block_until_ready(_reference_forward(x, params))

    # f32 matmul operands: tight correctness check.
    fwd = jax.jit(in_conv_forward)
    out = jax.block_until_ready(fwd(x, params))
    assert out.shape == (N, Cout, H, W), out.shape
    max_err = float(jnp.max(jnp.abs(out - ref)))
    assert jnp.allclose(out, ref, atol=1e-4, rtol=1e-4), max_err

    # bf16 matmul operands (v6e/v7x MXU-native path), f32 accumulation: relaxed tolerance.
    fwd_bf16 = jax.jit(lambda xx, pp: in_conv_forward(xx, pp, matmul_dtype=jnp.bfloat16))
    out_bf16 = jax.block_until_ready(fwd_bf16(x, params))
    assert out_bf16.shape == (N, Cout, H, W), out_bf16.shape
    rel = float(jnp.linalg.norm(out_bf16 - ref) / jnp.linalg.norm(ref))
    assert rel < 5e-2, rel

    print("KERNEL_OK")
</pallas_src>

<mosaic_0001>
module attributes {stable_mosaic.version = 11 : i64} {
  func.func @fused_convblock_kernel(%arg0: i32, %arg1: i32, %arg2: memref<1x16x64xf32, #tpu.memory_space<vmem>>, %arg3: memref<1x8x64xf32, #tpu.memory_space<vmem>>, %arg4: memref<1x8x64xf32, #tpu.memory_space<vmem>>, %arg5: memref<3x64x128xf32, #tpu.memory_space<vmem>>, %arg6: memref<1x128xf32, #tpu.memory_space<vmem>>, %arg7: memref<384x128xf32, #tpu.memory_space<vmem>>, %arg8: memref<1x128xf32, #tpu.memory_space<vmem>>, %arg9: memref<1x16x128xf32, #tpu.memory_space<vmem>>, %arg10: memref<20x64xf32, #tpu.memory_space<vmem>>, %arg11: memref<18x128xf32, #tpu.memory_space<vmem>>) attributes {dimension_semantics = [#tpu.dimension_semantics<parallel>, #tpu.dimension_semantics<parallel>], iteration_bounds = array<i64: 2, 1>, scalar_prefetch = 0 : i64, scratch_operands = 2 : i64, tpu.core_type = #tpu.core_type<tc>, window_params = [{transform_indices = @transform_0, window_bounds = array<i64: 1, 16, 64>}, {transform_indices = @transform_1, window_bounds = array<i64: 1, 8, 64>}, {transform_indices = @transform_2, window_bounds = array<i64: 1, 8, 64>}, {pipeline_mode = #tpu.pipeline_mode<synchronous>, transform_indices = @transform_3, window_bounds = array<i64: 3, 64, 128>}, {pipeline_mode = #tpu.pipeline_mode<synchronous>, transform_indices = @transform_4, window_bounds = array<i64: 1, 128>}, {pipeline_mode = #tpu.pipeline_mode<synchronous>, transform_indices = @transform_5, window_bounds = array<i64: 384, 128>}, {pipeline_mode = #tpu.pipeline_mode<synchronous>, transform_indices = @transform_6, window_bounds = array<i64: 1, 128>}, {transform_indices = @transform_7, window_bounds = array<i64: 1, 16, 128>}]} {
    %c0 = arith.constant 0 : index
    %c0_0 = arith.constant 0 : index
    %c0_1 = arith.constant 0 : index
    %0 = vector.load %arg2[%c0, %c0_0, %c0_1] : memref<1x16x64xf32, #tpu.memory_space<vmem>>, vector<1x16x64xf32>
    %1 = vector.shape_cast %0 : vector<1x16x64xf32> to vector<16x64xf32>
    %c2 = arith.constant 2 : index
    %c0_2 = arith.constant 0 : index
    %2 = vector.load %arg10[%c2, %c0_2] : memref<20x64xf32, #tpu.memory_space<vmem>>, vector<16x64xf32>
    tpu.vector_store %arg10[%c2, %c0_2], %1 {strides = array<i32>} : memref<20x64xf32, #tpu.memory_space<vmem>>, vector<16x64xf32>,
    %c0_i32 = arith.constant 0 : i32
    %3 = arith.cmpi sgt, %arg1, %c0_i32 : i32
    %4 = arith.extui %3 : i1 to i32
    %c0_i32_3 = arith.constant 0 : i32
    %5 = arith.cmpi ne, %4, %c0_i32_3 : i32
    scf.if %5 {
      %c0_50 = arith.constant 0 : index
      %c6 = arith.constant 6 : index
      %c0_51 = arith.constant 0 : index
      %54 = vector.load %arg3[%c0_50, %c6, %c0_51] : memref<1x8x64xf32, #tpu.memory_space<vmem>>, vector<1x2x64xf32>
      %55 = vector.shape_cast %54 : vector<1x2x64xf32> to vector<2x64xf32>
      %c0_52 = arith.constant 0 : index
      %c0_53 = arith.constant 0 : index
      %56 = vector.load %arg10[%c0_52, %c0_53] : memref<20x64xf32, #tpu.memory_space<vmem>>, vector<2x64xf32>
      tpu.vector_store %arg10[%c0_52, %c0_53], %55 {strides = array<i32>} : memref<20x64xf32, #tpu.memory_space<vmem>>, vector<2x64xf32>,
    } else {
    }
    %c0_i32_4 = arith.constant 0 : i32
    %6 = arith.cmpi eq, %arg1, %c0_i32_4 : i32
    %7 = arith.extui %6 : i1 to i32
    %c0_i32_5 = arith.constant 0 : i32
    %8 = arith.cmpi ne, %7, %c0_i32_5 : i32
    scf.if %8 {
      %cst_50 = arith.constant 0.000000e+00 : f32
      %54 = vector.broadcast %cst_50 : f32 to vector<2x64xf32>
      %c0_51 = arith.constant 0 : index
      %c0_52 = arith.constant 0 : index
      %55 = vector.load %arg10[%c0_51, %c0_52] : memref<20x64xf32, #tpu.memory_space<vmem>>, vector<2x64xf32>
      tpu.vector_store %arg10[%c0_51, %c0_52], %54 {strides = array<i32>} : memref<20x64xf32, #tpu.memory_space<vmem>>, vector<2x64xf32>,
    } else {
    }
    %c0_i32_6 = arith.constant 0 : i32
    %9 = arith.cmpi slt, %arg1, %c0_i32_6 : i32
    %10 = arith.extui %9 : i1 to i32
    %c0_i32_7 = arith.constant 0 : i32
    %11 = arith.cmpi ne, %10, %c0_i32_7 : i32
    scf.if %11 {
      %c0_50 = arith.constant 0 : index
      %c0_51 = arith.constant 0 : index
      %c0_52 = arith.constant 0 : index
      %54 = vector.load %arg4[%c0_50, %c0_51, %c0_52] : memref<1x8x64xf32, #tpu.memory_space<vmem>>, vector<1x2x64xf32>
      %55 = vector.shape_cast %54 : vector<1x2x64xf32> to vector<2x64xf32>
      %c18 = arith.constant 18 : index
      %c0_53 = arith.constant 0 : index
      %56 = vector.load %arg10[%c18, %c0_53] : memref<20x64xf32, #tpu.memory_space<vmem>>, vector<2x64xf32>
      tpu.vector_store %arg10[%c18, %c0_53], %55 {strides = array<i32>} : memref<20x64xf32, #tpu.memory_space<vmem>>, vector<2x64xf32>,
    } else {
    }
    %c0_i32_8 = arith.constant 0 : i32
    %12 = arith.cmpi eq, %arg1, %c0_i32_8 : i32
    %13 = arith.extui %12 : i1 to i32
    %c0_i32_9 = arith.constant 0 : i32
    %14 = arith.cmpi ne, %13, %c0_i32_9 : i32
    scf.if %14 {
      %cst_50 = arith.constant 0.000000e+00 : f32
      %54 = vector.broadcast %cst_50 : f32 to vector<2x64xf32>
      %c18 = arith.constant 18 : index
      %c0_51 = arith.constant 0 : index
      %55 = vector.load %arg10[%c18, %c0_51] : memref<20x64xf32, #tpu.memory_space<vmem>>, vector<2x64xf32>
      tpu.vector_store %arg10[%c18, %c0_51], %54 {strides = array<i32>} : memref<20x64xf32, #tpu.memory_space<vmem>>, vector<2x64xf32>,
    } else {
    }
    %c0_10 = arith.constant 0 : index
    %c0_11 = arith.constant 0 : index
    %15 = vector.load %arg10[%c0_10, %c0_11] : memref<20x64xf32, #tpu.memory_space<vmem>>, vector<18x64xf32>
    %c0_12 = arith.constant 0 : index
    %c0_13 = arith.constant 0 : index
    %c0_14 = arith.constant 0 : index
    %16 = vector.load %arg5[%c0_12, %c0_13, %c0_14] : memref<3x64x128xf32, #tpu.memory_space<vmem>>, vector<1x64x128xf32>
    %17 = vector.shape_cast %16 : vector<1x64x128xf32> to vector<64x128xf32>
    %cst = arith.constant dense<0.000000e+00> : vector<18x128xf32>
    %18 = tpu.matmul %15, %17, %cst {dimension_numbers = #tpu.dot_dimension_numbers<[1], [0], [0], [1], [0, 0, 1, 1], [], []>} : vector<18x64xf32>, vector<64x128xf32>, vector<18x128xf32> -> vector<18x128xf32>
    %c1 = arith.constant 1 : index
    %c0_15 = arith.constant 0 : index
    %19 = vector.load %arg10[%c1, %c0_15] : memref<20x64xf32, #tpu.memory_space<vmem>>, vector<18x64xf32>
    %c1_16 = arith.constant 1 : index
    %c0_17 = arith.constant 0 : index
    %c0_18 = arith.constant 0 : index
    %20 = vector.load %arg5[%c1_16, %c0_17, %c0_18] : memref<3x64x128xf32, #tpu.memory_space<vmem>>, vector<1x64x128xf32>
    %21 = vector.shape_cast %20 : vector<1x64x128xf32> to vector<64x128xf32>
    %cst_19 = arith.constant dense<0.000000e+00> : vector<18x128xf32>
    %22 = tpu.matmul %19, %21, %cst_19 {dimension_numbers = #tpu.dot_dimension_numbers<[1], [0], [0], [1], [0, 0, 1, 1], [], []>} : vector<18x64xf32>, vector<64x128xf32>, vector<18x128xf32> -> vector<18x128xf32>
    %23 = arith.addf %18, %22 : vector<18x128xf32>
    %c2_20 = arith.constant 2 : index
    %c0_21 = arith.constant 0 : index
    %24 = vector.load %arg10[%c2_20, %c0_21] : memref<20x64xf32, #tpu.memory_space<vmem>>, vector<18x64xf32>
    %c2_22 = arith.constant 2 : index
    %c0_23 = arith.constant 0 : index
    %c0_24 = arith.constant 0 : index
    %25 = vector.load %arg5[%c2_22, %c0_23, %c0_24] : memref<3x64x128xf32, #tpu.memory_space<vmem>>, vector<1x64x128xf32>
    %26 = vector.shape_cast %25 : vector<1x64x128xf32> to vector<64x128xf32>
    %cst_25 = arith.constant dense<0.000000e+00> : vector<18x128xf32>
    %27 = tpu.matmul %24, %26, %cst_25 {dimension_numbers = #tpu.dot_dimension_numbers<[1], [0], [0], [1], [0, 0, 1, 1], [], []>} : vector<18x64xf32>, vector<64x128xf32>, vector<18x128xf32> -> vector<18x128xf32>
    %28 = arith.addf %23, %27 : vector<18x128xf32>
    %c0_26 = arith.constant 0 : index
    %c0_27 = arith.constant 0 : index
    %29 = vector.load %arg6[%c0_26, %c0_27] : memref<1x128xf32, #tpu.memory_space<vmem>>, vector<1x128xf32>
    %30 = vector.broadcast %29 : vector<1x128xf32> to vector<18x128xf32>
    %31 = arith.addf %28, %30 : vector<18x128xf32>
    %cst_28 = arith.constant 0.000000e+00 : f32
    %32 = vector.broadcast %cst_28 : f32 to vector<18x128xf32>
    %33 = arith.maximumf %31, %32 : vector<18x128xf32>
    %c0_29 = arith.constant 0 : index
    %c0_30 = arith.constant 0 : index
    %34 = vector.load %arg11[%c0_29, %c0_30] : memref<18x128xf32, #tpu.memory_space<vmem>>, vector<18x128xf32>
    tpu.vector_store %arg11[%c0_29, %c0_30], %33 {strides = array<i32>} : memref<18x128xf32, #tpu.memory_space<vmem>>, vector<18x128xf32>,
    %c0_i32_31 = arith.constant 0 : i32
    %35 = arith.cmpi eq, %arg1, %c0_i32_31 : i32
    %36 = arith.extui %35 : i1 to i32
    %c0_i32_32 = arith.constant 0 : i32
    %37 = arith.cmpi ne, %36, %c0_i32_32 : i32
    scf.if %37 {
      %cst_50 = arith.constant 0.000000e+00 : f32
      %54 = vector.broadcast %cst_50 : f32 to vector<1x128xf32>
      %c0_51 = arith.constant 0 : index
      %c0_52 = arith.constant 0 : index
      %55 = vector.load %arg11[%c0_51, %c0_52] : memref<18x128xf32, #tpu.memory_space<vmem>>, vector<1x128xf32>
      tpu.vector_store %arg11[%c0_51, %c0_52], %54 {strides = array<i32>} : memref<18x128xf32, #tpu.memory_space<vmem>>, vector<1x128xf32>,
    } else {
    }
    %c0_i32_33 = arith.constant 0 : i32
    %38 = arith.cmpi eq, %arg1, %c0_i32_33 : i32
    %39 = arith.extui %38 : i1 to i32
    %c0_i32_34 = arith.constant 0 : i32
    %40 = arith.cmpi ne, %39, %c0_i32_34 : i32
    scf.if %40 {
      %cst_50 = arith.constant 0.000000e+00 : f32
      %54 = vector.broadcast %cst_50 : f32 to vector<1x128xf32>
      %c17 = arith.constant 17 : index
      %c0_51 = arith.constant 0 : index
      %55 = vector.load %arg11[%c17, %c0_51] : memref<18x128xf32, #tpu.memory_space<vmem>>, vector<1x128xf32>
      tpu.vector_store %arg11[%c17, %c0_51], %54 {strides = array<i32>} : memref<18x128xf32, #tpu.memory_space<vmem>>, vector<1x128xf32>,
    } else {
    }
    %c0_35 = arith.constant 0 : index
    %c0_36 = arith.constant 0 : index
    %41 = vector.load %arg11[%c0_35, %c0_36] : memref<18x128xf32, #tpu.memory_space<vmem>>, vector<16x128xf32>
    %c1_37 = arith.constant 1 : index
    %c0_38 = arith.constant 0 : index
    %42 = vector.load %arg11[%c1_37, %c0_38] : memref<18x128xf32, #tpu.memory_space<vmem>>, vector<16x128xf32>
    %c2_39 = arith.constant 2 : index
    %c0_40 = arith.constant 0 : index
    %43 = vector.load %arg11[%c2_39, %c0_40] : memref<18x128xf32, #tpu.memory_space<vmem>>, vector<16x128xf32>
    %44 = tpu.concatenate %41, %42, %43 in 1 : vector<16x128xf32>, vector<16x128xf32>, vector<16x128xf32> -> vector<16x384xf32>
    %c0_41 = arith.constant 0 : index
    %c0_42 = arith.constant 0 : index
    %45 = vector.load %arg7[%c0_41, %c0_42] : memref<384x128xf32, #tpu.memory_space<vmem>>, vector<384x128xf32>
    %cst_43 = arith.constant dense<0.000000e+00> : vector<16x128xf32>
    %46 = tpu.matmul %44, %45, %cst_43 {dimension_numbers = #tpu.dot_dimension_numbers<[1], [0], [0], [1], [0, 0, 1, 1], [], []>} : vector<16x384xf32>, vector<384x128xf32>, vector<16x128xf32> -> vector<16x128xf32>
    %c0_44 = arith.constant 0 : index
    %c0_45 = arith.constant 0 : index
    %47 = vector.load %arg8[%c0_44, %c0_45] : memref<1x128xf32, #tpu.memory_space<vmem>>, vector<1x128xf32>
    %48 = vector.broadcast %47 : vector<1x128xf32> to vector<16x128xf32>
    %49 = arith.addf %46, %48 : vector<16x128xf32>
    %cst_46 = arith.constant 0.000000e+00 : f32
    %50 = vector.broadcast %cst_46 : f32 to vector<16x128xf32>
    %51 = arith.maximumf %49, %50 : vector<16x128xf32>
    %52 = vector.shape_cast %51 : vector<16x128xf32> to vector<1x16x128xf32>
    %c0_47 = arith.constant 0 : index
    %c0_48 = arith.constant 0 : index
    %c0_49 = arith.constant 0 : index
    %53 = vector.load %arg9[%c0_47, %c0_48, %c0_49] : memref<1x16x128xf32, #tpu.memory_space<vmem>>, vector<1x16x128xf32>
    tpu.vector_store %arg9[%c0_47, %c0_48, %c0_49], %52 {strides = array<i32>} : memref<1x16x128xf32, #tpu.memory_space<vmem>>, vector<1x16x128xf32>,
    return
  }
  func.func @transform_0(%arg0: i32, %arg1: i32) -> (i32, i32, i32) {
    %c0_i32 = arith.constant 0 : i32
    %c0_i32_0 = arith.constant 0 : i32
    return %arg0, %arg1, %c0_i32 : i32, i32, i32
  }
  func.func @transform_1(%arg0: i32, %arg1: i32) -> (i32, i32, i32) {
    %c2_i32 = arith.constant 2 : i32
    %0 = arith.muli %arg1, %c2_i32 : i32
    %c1_i32 = arith.constant 1 : i32
    %1 = arith.subi %0, %c1_i32 : i32
    %c0_i32 = arith.constant 0 : i32
    %2 = arith.maxsi %1, %c0_i32 : i32
    %c0_i32_0 = arith.constant 0 : i32
    %c0_i32_1 = arith.constant 0 : i32
    return %arg0, %2, %c0_i32_0 : i32, i32, i32
  }
  func.func @transform_2(%arg0: i32, %arg1: i32) -> (i32, i32, i32) {
    %c1_i32 = arith.constant 1 : i32
    %0 = arith.addi %arg1, %c1_i32 : i32
    %c2_i32 = arith.constant 2 : i32
    %1 = arith.muli %0, %c2_i32 : i32
    %c1_i32_0 = arith.constant 1 : i32
    %2 = arith.minsi %1, %c1_i32_0 : i32
    %c0_i32 = arith.constant 0 : i32
    %c0_i32_1 = arith.constant 0 : i32
    return %arg0, %2, %c0_i32 : i32, i32, i32
  }
  func.func @transform_3(%arg0: i32, %arg1: i32) -> (i32, i32, i32) {
    %c0_i32 = arith.constant 0 : i32
    %c0_i32_0 = arith.constant 0 : i32
    %c0_i32_1 = arith.constant 0 : i32
    %c0_i32_2 = arith.constant 0 : i32
    return %c0_i32, %c0_i32_0, %c0_i32_1 : i32, i32, i32
  }
  func.func @transform_4(%arg0: i32, %arg1: i32) -> (i32, i32) {
    %c0_i32 = arith.constant 0 : i32
    %c0_i32_0 = arith.constant 0 : i32
    %c0_i32_1 = arith.constant 0 : i32
    return %c0_i32, %c0_i32_0 : i32, i32
  }
  func.func @transform_5(%arg0: i32, %arg1: i32) -> (i32, i32) {
    %c0_i32 = arith.constant 0 : i32
    %c0_i32_0 = arith.constant 0 : i32
    %c0_i32_1 = arith.constant 0 : i32
    return %c0_i32, %c0_i32_0 : i32, i32
  }
  func.func @transform_6(%arg0: i32, %arg1: i32) -> (i32, i32) {
    %c0_i32 = arith.constant 0 : i32
    %c0_i32_0 = arith.constant 0 : i32
    %c0_i32_1 = arith.constant 0 : i32
    return %c0_i32, %c0_i32_0 : i32, i32
  }
  func.func @transform_7(%arg0: i32, %arg1: i32) -> (i32, i32, i32) {
    %c0_i32 = arith.constant 0 : i32
    %c0_i32_0 = arith.constant 0 : i32
    return %arg0, %arg1, %c0_i32 : i32, i32, i32
  }
}

</mosaic_0001>

<bundles_post_ra>
// kernel: in_conv_forward.1
= control target key start
LH: loop header
LB: loop body
LE: loop exit
PB: predicated region body
PF: predicated region fallthrough
CT: control target
= control target key end

     0   :  { %s1468_s24 = smov 0   ;;  %s1470_s1 = smov 0   ;;  %s1787_s0 = inlined_call_operand.vmem [shape: f32[2,16,64], index: 0, kind: input, shape index: {}, may-alias: {0,1,2}]   ;;  %s1788_s1 = inlined_call_operand.vmem [shape: f32[2,16,64], index: 1, kind: input, shape index: {}, may-alias: {0,1,2}]   ;;  %s1789_s2 = inlined_call_operand.vmem [shape: f32[2,16,64], index: 2, kind: input, shape index: {}, may-alias: {0,1,2}]   ;;  %s1790_s3 = inlined_call_operand.vmem [shape: f32[3,64,128], index: 3, kind: input, shape index: {}]   ;;  %s1791_s4 = inlined_call_operand.vmem [shape: f32[1,128], index: 4, kind: input, shape index: {}]   ;;  %s1792_s5 = inlined_call_operand.vmem [shape: f32[384,128], index: 5, kind: input, shape index: {}]   ;;  %s1793_s6 = inlined_call_operand.vmem [shape: f32[1,128], index: 6, kind: input, shape index: {}]   ;;  %s1794_s7 = inlined_call_operand.vmem [shape: f32[2,16,128], index: 7, kind: output, shape index: {}]  }
   0x1   :  { %s1472_s2 = smov 0  }
   0x2 LB: > { %s29_s25 = sadd.s32 1, %s1420_s1  ;;  %p1134_p0 = scmp.ge.s32.totalorder %s1424_s2, 1  ;;  %s1424_s2 = sphi %s1472_s2, %s17_s2   ;;  %s1420_s1 = sphi %s1470_s1, %s1796_s1   ;;  %s1416_s24 = sphi %s1468_s24, %s1795_s24  }
   0x3   : > { %p31_p1 = scmp.ge.s32.totalorder %s29_s25, 2  ;;  %p320_p2 = scmp.lt.s32.totalorder %s1424_s2, 3 }
   0x5   : > { %s1798_s25 = smov (%p31_p1, %s29_s25), 0  ;;  %p321_p3 = pnand %p1134_p0, %p320_p2 }
   0x6   : > { %p385_p4 = scmp.lt.s32.totalorder (!%p321_p3), %s1416_s24, 1 }
   0x7   : > { %324 = sbr.rel (%p321_p3) target bundleno = 466 (0x1d2), region = 48 }
   0xc   : > { %v1150_v0 = vld [vmem:[%s1790_s3 + $0x78] sm:$0xff]  ;;  %v1426_v2 = vmov 0.0   ;;  %v1149_v3 = vld [vmem:[%s1790_s3 + $0x70] sm:$0xff]  ;;  %vm452_vm0 = vcmask 517120   ;;  %s1800_s24 = smov (!%p385_p4, %s1416_s24), 1  ;;  %v1148_v5 = vld [vmem:[%s1790_s3 + $0x68] sm:$0xff] }
   0xd   : > { %v476_v1 = vld [vmem:[%s1790_s3 + $0x38] sm:$0xff]  ;;  %1266 = vmatprep.subr.mxu0 %v1426_v2  ;;  %1291 = vmatprep.subr.mxu1 %v1426_v2  ;;  %v475_v4 = vld [vmem:[%s1790_s3 + $0x30] sm:$0xff]  ;;  %453 = vst.msk [vmem:[#allocation2] sm:$0x3] %vm452_vm0, %v1426_v2  ;;  %465 = vst.msk [vmem:[#allocation2 + $0x12] sm:$0x3] %vm452_vm0, %v1426_v2 }
   0xe   : > { %1267 = vmatpush3.msra.mxu0 %v1150_v0  ;;  %1292 = vmatpush3.msra.mxu1 %v476_v1  ;;  %v474_v6 = vld [vmem:[%s1790_s3 + $0x28] sm:$0xff]  ;;  %s1172_s15 = sshll.u32 %s1800_s24, 4  ;;  %vm438_vm1 = vcmask 523264   ;;  %v1147_v7 = vld [vmem:[%s1790_s3 + $0x60] sm:$0xff]  ;;  %v1146_v11 = vld [vmem:[%s1790_s3 + $0x58] sm:$0xff]  ;;  %vm1427_vm2 = vmmov 0  }
   0xf   : > { %1268 = vmatprep.subr.mxu0 %v1426_v2  ;;  %1293 = vmatprep.subr.mxu1 %v1426_v2  ;;  %v473_v8 = vld [vmem:[%s1790_s3 + $0x20] sm:$0xff]  ;;  %s392_s22 = scalar_lea.vmem %s1787_s0, %s1172_s15  ;;  %v472_v12 = vld [vmem:[%s1790_s3 + $0x18] sm:$0xff]  ;;  %v1145_v13 = vld [vmem:[%s1790_s3 + $0x50] sm:$0xff]  ;;  %s434_s17 = scalar_lea.vmem %s1794_s7, %s1172_s15 }
  0x10   : > { %1269 = vmatpush3.msra.mxu0 %v1149_v3  ;;  %1294 = vmatpush3.msra.mxu1 %v475_v4  ;;  %v436_v9 = vld [vmem:[%s392_s22] sm:$0xff]  ;;  %v437_v10 = vld [vmem:[%s392_s22 + $0x8] sm:$0xff]  ;;  %v471_v14 = vld [vmem:[%s1790_s3 + $0x10] sm:$0xff] }
  0x11   : > { %1270 = vmatprep.subr.mxu0 %v1426_v2  ;;  %1295 = vmatprep.subr.mxu1 %v1426_v2  ;;  %439 = vst.msk [vmem:[#allocation2 + $0x2] sm:$0xff] %vm438_vm1, %v436_v9  ;;  %440 = vst.msk [vmem:[#allocation2 + $0xa] sm:$0xff] %vm438_vm1, %v437_v10  ;;  %v1144_v15 = vld [vmem:[%s1790_s3 + $0x48] sm:$0xff]  ;;  %v1143_v17 = vld [vmem:[%s1790_s3 + $0x40] sm:$0xff] }
  0x12   : > { %1271 = vmatpush3.msra.mxu0 %v1148_v5  ;;  %1296 = vmatpush3.msra.mxu1 %v474_v6  ;;  %v470_v16 = vld [vmem:[%s1790_s3 + $0x8] sm:$0xff]  ;;  %v469_v19 = vld [vmem:[%s1790_s3] sm:$0xff]  ;;  %v1164_v21 = vld [vmem:[%s1790_s3 + $0xb8] sm:$0xff] }
  0x13   : > { %1272 = vmatprep.subr.mxu0 %v1426_v2  ;;  %1297 = vmatprep.subr.mxu1 %v1426_v2  ;;  %v1163_v22 = vld [vmem:[%s1790_s3 + $0xb0] sm:$0xff]  ;;  %v1162_v24 = vld [vmem:[%s1790_s3 + $0xa8] sm:$0xff]  ;;  %v1161_v26 = vld [vmem:[%s1790_s3 + $0xa0] sm:$0xff] }
  0x14   : > { %1273 = vmatpush3.msra.mxu0 %v1147_v7  ;;  %1298 = vmatpush3.msra.mxu1 %v473_v8  ;;  %v1160_v28 = vld [vmem:[%s1790_s3 + $0x98] sm:$0xff]  ;;  %v1159_v30 = vld [vmem:[%s1790_s3 + $0x90] sm:$0xff]  ;;  %v1158_v31 = vld [vmem:[%s1790_s3 + $0x88] sm:$0xff] }
  0x15   : > { %1274 = vmatprep.subr.mxu0 %v1426_v2  ;;  %1299 = vmatprep.subr.mxu1 %v1426_v2  ;;  %v1157_v32 = vld [vmem:[%s1790_s3 + $0x80] sm:$0xff]  ;;  %v669_v35 = vld [vmem:[#allocation2 + $0x12] sm:$0x3]  ;;  %v829_v36 = vld [vmem:[%s1792_s5 + $0xf8] sm:$0xff] }
  0x16   : > { %1275 = vmatpush3.msra.mxu0 %v1146_v11  ;;  %1300 = vmatpush3.msra.mxu1 %v472_v12  ;;  %v813_v37 = vld [vmem:[%s1792_s5 + $0x78] sm:$0xff]  ;;  %v828_v38 = vld [vmem:[%s1792_s5 + $0xf0] sm:$0xff]  ;;  %v827_v40 = vld [vmem:[%s1792_s5 + $0xe8] sm:$0xff] }
  0x17   : > { %1276 = vmatprep.subr.mxu0 %v1426_v2  ;;  %1301 = vmatprep.subr.mxu1 %v1426_v2  ;;  %v812_v39 = vld [vmem:[%s1792_s5 + $0x70] sm:$0xff]  ;;  %v845_v41 = vld [vmem:[%s1792_s5 + $0x178] sm:$0xff]  ;;  %v811_v42 = vld [vmem:[%s1792_s5 + $0x68] sm:$0xff] }
  0x18   : > { %1277 = vmatpush3.msra.mxu0 %v1145_v13  ;;  %1302 = vmatpush3.msra.mxu1 %v471_v14  ;;  %v477_v18 = vld [vmem:[#allocation2 + $0x1] sm:$0xff]  ;;  %v478_v23 = vld [vmem:[#allocation2 + $0x9] sm:$0xff]  ;;  %v479_v27 = vld [vmem:[#allocation2 + $0x11] sm:$0x3] }
  0x19   : > { %1278 = vmatprep.subr.mxu0 %v1426_v2  ;;  %1303 = vmatprep.subr.mxu1 %v1426_v2  ;;  %v466_v20 = vld [vmem:[#allocation2] sm:$0xff]  ;;  %v467_v25 = vld [vmem:[#allocation2 + $0x8] sm:$0xff]  ;;  %v468_v29 = vld [vmem:[#allocation2 + $0x10] sm:$0x3] }
  0x1a   : > { %1279 = vmatpush3.msra.mxu0 %v1144_v15  ;;  %1304 = vmatpush3.msra.mxu1 %v470_v16  ;;  %v667_v33 = vld [vmem:[#allocation2 + $0x2] sm:$0xff]  ;;  %v668_v34 = vld [vmem:[#allocation2 + $0xa] sm:$0xff]  ;;  %v825_v46 = vld [vmem:[%s1792_s5 + $0xd8] sm:$0xff] }
  0x1b   : > { %1280 = vmatprep.subr.mxu0 %v1426_v2  ;;  %1282 = vmatprep.mubr.msk.f32.mxu0 %vm1427_vm2, %v1426_v2  ;;  %v826_v43 = vld [vmem:[%s1792_s5 + $0xe0] sm:$0xff]  ;;  %v844_v44 = vld [vmem:[%s1792_s5 + $0x170] sm:$0xff]  ;;  %v843_v47 = vld [vmem:[%s1792_s5 + $0x168] sm:$0xff] }
  0x1c   : > { %1281 = vmatpush3.msra.mxu0 %v1143_v17  ;;  %1305 = vmatprep.subr.mxu1 %v1426_v2  ;;  %v810_v45 = vld [vmem:[%s1792_s5 + $0x60] sm:$0xff]  ;;  %v809_v48 = vld [vmem:[%s1792_s5 + $0x58] sm:$0xff]  ;;  %v824_v49 = vld [vmem:[%s1792_s5 + $0xd0] sm:$0xff] }
  0x1d   : > { %1283 = vmatmul.mubr.msk.f32.vlgmr.msra.gmra.mxu0 %vm438_vm1, %v477_v18  ;;  %1306 = vmatpush3.msra.mxu1 %v469_v19  ;;  %v842_v50 = vld [vmem:[%s1792_s5 + $0x160] sm:$0xff]  ;;  %v808_v51 = vld [vmem:[%s1792_s5 + $0x50] sm:$0xff]  ;;  %v823_v52 = vld [vmem:[%s1792_s5 + $0xc8] sm:$0xff] }
  0x1e   : > { %1307 = vmatprep.mubr.msk.f32.mxu1 %vm1427_vm2, %v1426_v2  ;;  %1316 = vmatprep.subr.mxu0 %v1426_v2  ;;  %v841_v53 = vld [vmem:[%s1792_s5 + $0x158] sm:$0xff]  ;;  %v807_v54 = vld [vmem:[%s1792_s5 + $0x48] sm:$0xff]  ;;  %v822_v55 = vld [vmem:[%s1792_s5 + $0xc0] sm:$0xff] }
  0x1f   : > { %1308 = vmatmul.mubr.msk.f32.vlgmr.msra.gmra.mxu1 %vm438_vm1, %v466_v20  ;;  %1317 = vmatpush3.msra.mxu0 %v1164_v21  ;;  %v840_v56 = vld [vmem:[%s1792_s5 + $0x150] sm:$0xff]  ;;  %v806_v57 = vld [vmem:[%s1792_s5 + $0x40] sm:$0xff]  ;;  %v821_v58 = vld [vmem:[%s1792_s5 + $0xb8] sm:$0xff] }
  0x20   : > { %1318 = vmatprep.subr.mxu0 %v1426_v2  ;;  %1285 = vmatprep.mubr.msk.f32.mxu0 %vm1427_vm2, %v1426_v2  ;;  %v839_v59 = vld [vmem:[%s1792_s5 + $0x148] sm:$0xff]  ;;  %v805_v60 = vld [vmem:[%s1792_s5 + $0x38] sm:$0xff]  ;;  %v820_v61 = vld [vmem:[%s1792_s5 + $0xb0] sm:$0xff] }
  0x21   : > { %1319 = vmatpush3.msra.mxu0 %v1163_v22  ;;  %1310 = vmatprep.mubr.msk.f32.mxu1 %vm1427_vm2, %v1426_v2  ;;  %v838_v62 = vld [vmem:[%s1792_s5 + $0x140] sm:$0xff]  ;;  %v804_v63 = vld [vmem:[%s1792_s5 + $0x30] sm:$0xff]  ;;  %v819_v0 = vld [vmem:[%s1792_s5 + $0xa8] sm:$0xff] }
  0x22   : > { %1320 = vmatprep.subr.mxu0 %v1426_v2  ;;  %1286 = vmatmul.mubr.msk.f32.gmra.mxu0 %vm438_vm1, %v478_v23  ;;  %v837_v1 = vld [vmem:[%s1792_s5 + $0x138] sm:$0xff]  ;;  %v803_v3 = vld [vmem:[%s1792_s5 + $0x28] sm:$0xff]  ;;  %v818_v4 = vld [vmem:[%s1792_s5 + $0xa0] sm:$0xff] }
  0x23   : > { %1321 = vmatpush3.msra.mxu0 %v1162_v24  ;;  %1311 = vmatmul.mubr.msk.f32.gmra.mxu1 %vm438_vm1, %v467_v25  ;;  %v836_v5 = vld [vmem:[%s1792_s5 + $0x130] sm:$0xff]  ;;  %v802_v6 = vld [vmem:[%s1792_s5 + $0x20] sm:$0xff]  ;;  %v817_v7 = vld [vmem:[%s1792_s5 + $0x98] sm:$0xff] }
  0x24   : > { %1322 = vmatprep.subr.mxu0 %v1426_v2  ;;  %1288 = vmatprep.mubr.msk.f32.mxu0 %vm1427_vm2, %v1426_v2  ;;  %v835_v8 = vld [vmem:[%s1792_s5 + $0x128] sm:$0xff]  ;;  %v801_v9 = vld [vmem:[%s1792_s5 + $0x18] sm:$0xff]  ;;  %v816_v10 = vld [vmem:[%s1792_s5 + $0x90] sm:$0xff] }
  0x25   : > { %1323 = vmatpush3.msra.mxu0 %v1161_v26  ;;  %1313 = vmatprep.mubr.msk.f32.mxu1 %vm1427_vm2, %v1426_v2  ;;  %v834_v11 = vld [vmem:[%s1792_s5 + $0x120] sm:$0xff]  ;;  %v800_v12 = vld [vmem:[%s1792_s5 + $0x10] sm:$0xff]  ;;  %v815_v13 = vld [vmem:[%s1792_s5 + $0x88] sm:$0xff] }
  0x26   : > { %1324 = vmatprep.subr.mxu0 %v1426_v2  ;;  %1289 = vmatmul.mubr.msk.f32.gmra.mxu0 %vm438_vm1, %v479_v27  ;;  %v833_v14 = vld [vmem:[%s1792_s5 + $0x118] sm:$0xff]  ;;  %v799_v15 = vld [vmem:[%s1792_s5 + $0x8] sm:$0xff]  ;;  %v814_v16 = vld [vmem:[%s1792_s5 + $0x80] sm:$0xff] }
  0x27   : > { %1325 = vmatpush3.msra.mxu0 %v1160_v28  ;;  %1314 = vmatmul.mubr.msk.f32.gmra.mxu1 %vm438_vm1, %v468_v29  ;;  %v832_v17 = vld [vmem:[%s1792_s5 + $0x110] sm:$0xff]  ;;  %v798_v18 = vld [vmem:[%s1792_s5] sm:$0xff]  ;;  %v831_v19 = vld [vmem:[%s1792_s5 + $0x108] sm:$0xff] }
  0x28   : > { %1326 = vmatprep.subr.mxu0 %v1426_v2  ;;  %1332 = vmatprep.mubr.msk.f32.mxu0 %vm1427_vm2, %v1426_v2  ;;  %v830_v20 = vld [vmem:[%s1792_s5 + $0x100] sm:$0xff] }
  0x29   : > { %1327 = vmatpush3.msra.mxu0 %v1159_v30  ;;  %1210 = vmatprep.subr.mxu1 %v829_v36 }
  0x2a   : > { %1328 = vmatprep.subr.mxu0 %v1426_v2  ;;  %1211 = vmatpush3.msra.mxu1 %v813_v37 }
  0x2b   : > { %1329 = vmatpush3.msra.mxu0 %v1158_v31  ;;  %1212 = vmatprep.subr.mxu1 %v828_v38 }
  0x2c   : > { %1330 = vmatprep.subr.mxu0 %v1426_v2  ;;  %1213 = vmatpush3.msra.mxu1 %v812_v39 }
  0x2d   : > { %1331 = vmatpush3.msra.mxu0 %v1157_v32  ;;  %1214 = vmatprep.subr.mxu1 %v827_v40 }
  0x2e   : > { %1333 = vmatmul.mubr.msk.f32.vlgmr.msra.gmra.mxu0 %vm438_vm1, %v667_v33  ;;  %1341 = vmatprep.subr.mxu0 %v845_v41 }
  0x2f   : > { %1335 = vmatprep.mubr.msk.f32.mxu0 %vm1427_vm2, %v1426_v2  ;;  %1215 = vmatpush3.msra.mxu1 %v811_v42 }
  0x30   : > { %1342 = vmatpush3.msra.mxu0 %v845_v41  ;;  %1216 = vmatprep.subr.mxu1 %v826_v43 }
  0x31   : > { %1343 = vmatprep.subr.mxu0 %v844_v44  ;;  %1217 = vmatpush3.msra.mxu1 %v810_v45 }
  0x32   : > { %1336 = vmatmul.mubr.msk.f32.gmra.mxu0 %vm438_vm1, %v668_v34  ;;  %1218 = vmatprep.subr.mxu1 %v825_v46 }
  0x33   : > { %1338 = vmatprep.mubr.msk.f32.mxu0 %vm1427_vm2, %v1426_v2  ;;  %1344 = vmatpush3.msra.mxu0 %v844_v44 }
  0x34   : > { %1345 = vmatprep.subr.mxu0 %v843_v47  ;;  %1219 = vmatpush3.msra.mxu1 %v809_v48 }
  0x35   : > { %1346 = vmatpush3.msra.mxu0 %v843_v47  ;;  %1220 = vmatprep.subr.mxu1 %v824_v49 }
  0x36   : > { %1339 = vmatmul.mubr.msk.f32.gmra.mxu0 %vm438_vm1, %v669_v35  ;;  %1347 = vmatprep.subr.mxu0 %v842_v50  ;;  %v1168_v35 = vld [vmem:[%s1791_s4] ss:$0 sm:$0xff] }
  0x37   : > { %1221 = vmatpush3.msra.mxu1 %v808_v51  ;;  %1348 = vmatpush3.msra.mxu0 %v842_v50 }
  0x38   : > { %1222 = vmatprep.subr.mxu1 %v823_v52  ;;  %1349 = vmatprep.subr.mxu0 %v841_v53 }
  0x39   : > { %1223 = vmatpush3.msra.mxu1 %v807_v54  ;;  %1350 = vmatpush3.msra.mxu0 %v841_v53 }
  0x3a   : > { %1224 = vmatprep.subr.mxu1 %v822_v55  ;;  %1351 = vmatprep.subr.mxu0 %v840_v56 }
  0x3b   : > { %1225 = vmatpush3.msra.mxu1 %v806_v57  ;;  %1352 = vmatpush3.msra.mxu0 %v840_v56 }
  0x3c   : > { %1226 = vmatprep.subr.mxu1 %v821_v58  ;;  %1353 = vmatprep.subr.mxu0 %v839_v59 }
  0x3d   : > { %1227 = vmatpush3.msra.mxu1 %v805_v60  ;;  %1354 = vmatpush3.msra.mxu0 %v839_v59  ;;  %v1169_v59 = vld [vmem:[%s1793_s6] ss:$0 sm:$0xff] }
  0x3e   : > { %1228 = vmatprep.subr.mxu1 %v820_v61  ;;  %1355 = vmatprep.subr.mxu0 %v838_v62 }
  0x3f   : > { %1229 = vmatpush3.msra.mxu1 %v804_v63  ;;  %1356 = vmatpush3.msra.mxu0 %v838_v62 }
  0x40   : > { %1230 = vmatprep.subr.mxu1 %v819_v0  ;;  %1357 = vmatprep.subr.mxu0 %v837_v1 }
  0x41   : > { %1231 = vmatpush3.msra.mxu1 %v803_v3  ;;  %1358 = vmatpush3.msra.mxu0 %v837_v1 }
  0x42   : > { %1232 = vmatprep.subr.mxu1 %v818_v4  ;;  %1359 = vmatprep.subr.mxu0 %v836_v5 }
  0x43   : > { %1233 = vmatpush3.msra.mxu1 %v802_v6  ;;  %1360 = vmatpush3.msra.mxu0 %v836_v5 }
  0x44   : > { %1234 = vmatprep.subr.mxu1 %v817_v7  ;;  %1361 = vmatprep.subr.mxu0 %v835_v8 }
  0x45   : > { %1235 = vmatpush3.msra.mxu1 %v801_v9  ;;  %1362 = vmatpush3.msra.mxu0 %v835_v8 }
  0x46   : > { %1236 = vmatprep.subr.mxu1 %v816_v10  ;;  %1363 = vmatprep.subr.mxu0 %v834_v11 }
  0x47   : > { %1237 = vmatpush3.msra.mxu1 %v800_v12  ;;  %1364 = vmatpush3.msra.mxu0 %v834_v11 }
  0x48   : > { %1238 = vmatprep.subr.mxu1 %v815_v13  ;;  %1365 = vmatprep.subr.mxu0 %v833_v14 }
  0x49   : > { %1239 = vmatpush3.msra.mxu1 %v799_v15  ;;  %1366 = vmatpush3.msra.mxu0 %v833_v14 }
  0x4a   : > { %1240 = vmatprep.subr.mxu1 %v814_v16  ;;  %1367 = vmatprep.subr.mxu0 %v832_v17 }
  0x4b   : > { %1241 = vmatpush3.msra.mxu1 %v798_v18  ;;  %1368 = vmatpush3.msra.mxu0 %v832_v17 }
  0x4c   : > { %1369 = vmatprep.subr.mxu0 %v831_v19 }
  0x4d   : > { %1370 = vmatpush3.msra.mxu0 %v831_v19 }
  0x4e   : > { %1371 = vmatprep.subr.mxu0 %v830_v20 }
  0x4f   : > { %1372 = vmatpush3.msra.mxu0 %v830_v20 }
  0xdd   : > { %v564_v21 = vpop.f32.mrf.mxu0 }
  0xdf   : > { %v653_v22 = vpop.f32.mrf.mxu1  ;;  %v1284_v23 = vpop.f32.mrf.mxu0 }
  0xe0   : > { %v654_v33 = vadd.f32 %v653_v22, %v564_v21 }
  0xe1   : > { %v1309_v24 = vpop.f32.mrf.mxu1 }
  0xe2   : > { %v569_v25 = vpop.f32.mrf.mxu0 }
  0xe3   : > { %v658_v26 = vpop.f32.mrf.mxu1 }
  0xe4   : > { %v1287_v27 = vpop.f32.mrf.mxu0  ;;  %v659_v38 = vadd.f32 %v658_v26, %v569_v25 }
  0xe5   : > { %v1312_v28 = vpop.f32.mrf.mxu1 }
  0xe6   : > { %v574_v29 = vpop.f32.mrf.mxu0 }
  0xe7   : > { %v663_v30 = vpop.f32.mrf.mxu1 }
  0xe8   : > { %v1290_v31 = vpop.f32.mrf.mxu0  ;;  %v664_v44 = vadd.f32 %v663_v30, %v574_v29 }
  0xe9   : > { %v1315_v32 = vpop.f32.mrf.mxu1 }
  0xee   : > { %v754_v34 = vpop.f32.mrf.mxu0 }
  0xef   : > { %v768_v36 = vadd.f32 %v754_v34, %v654_v33 }
  0xf0   : > { %v1334_v37 = vpop.f32.mrf.mxu0 }
  0xf1   : > { %v778_v39 = vadd.f32 %v1168_v35, %v768_v36 }
  0xf2   : > { %v759_v40 = vpop.f32.mrf.mxu0 }
  0xf3   : > { %v781_v41 = vmax.f32 %v778_v39, 0.0  ;;  %v769_v42 = vadd.f32 %v759_v40, %v659_v38 }
  0xf4   : > { %v1337_v43 = vpop.f32.mrf.mxu0 }
  0xf5   : > { %784 = vst [vmem:[#allocation3] sm:$0xff] %v781_v41  ;;  %v779_v45 = vadd.f32 %v1168_v35, %v769_v42 }
  0xf6   : > { %790 = vst [vmem:[#allocation3] sm:$0x1] %v1426_v2  ;;  %v764_v46 = vpop.f32.mrf.mxu0 }
  0xf7   : > { %v782_v47 = vmax.f32 %v779_v45, 0.0  ;;  %v770_v48 = vadd.f32 %v764_v46, %v664_v44 }
  0xf8   : > { %v1340_v49 = vpop.f32.mrf.mxu0 }
  0xf9   : > { %785 = vst [vmem:[#allocation3 + $0x8] sm:$0xff] %v782_v47  ;;  %v780_v50 = vadd.f32 %v1168_v35, %v770_v48 }
  0xfb   : > { %v783_v51 = vmax.f32 %v780_v50, 0.0 }
  0xfd   : > { %786 = vst [vmem:[#allocation3 + $0x10] sm:$0x3] %v783_v51  ;;  %v792_v54 = vld [vmem:[#allocation3] sm:$0xff] }
  0xfe   : > { %791 = vst [vmem:[#allocation3 + $0x11] sm:$0x1] %v1426_v2 }
 0x100   : > { %v794_v52 = vld [vmem:[#allocation3 + $0x1] sm:$0xff] }
 0x101   : > { %v796_v53 = vld [vmem:[#allocation3 + $0x2] sm:$0xff]  ;;  %917 = vmatprep.mubr.f32.mxu1 %v794_v52 }
 0x102   : > { %1373 = vmatprep.mubr.f32.mxu0 %v796_v53  ;;  %918 = vmatmul.mubr.f32.vlgmr.msra.gmra.mxu1 %v792_v54 }
 0x104   : > { %v795_v55 = vld [vmem:[#allocation3 + $0x9] sm:$0xff] }
 0x105   : > { %922 = vmatprep.mubr.f32.mxu1 %v795_v55  ;;  %v797_v56 = vld [vmem:[#allocation3 + $0xa] sm:$0xff] }
 0x106   : > { %923 = vmatmul.mubr.f32.gmra.mxu1 %v782_v47  ;;  %1374 = vmatmul.mubr.f32.vlgmr.msra.gmra.mxu0 %v797_v56 }
 0x1c2   : > { %v1242_v57 = vpop.f32.mrf.mxu1 }
 0x1c4   : > { %v1243_v58 = vpop.f32.mrf.mxu1 }
 0x1c5   : > { %v1244_v60 = vadd.f32 %v1243_v58, %v1242_v57 }
 0x1c6   : > { %v1245_v2 = vpop.f32.mrf.mxu1  ;;  %v1375_v61 = vpop.f32.mrf.mxu0 }
 0x1c7   : > { %v920_v62 = vadd.f32 %v1244_v60, %v1169_v59 }
 0x1c8   : > { %v1246_v63 = vpop.f32.mrf.mxu1  ;;  %v994_v0 = vpop.f32.mrf.mxu0 }
 0x1c9   : > { %v1247_v1 = vadd.f32 %v1246_v63, %v1245_v2  ;;  %v995_v3 = vadd.f32 %v994_v0, %v920_v62 }
 0x1cb   : > { %v925_v4 = vadd.f32 %v1247_v1, %v1169_v59  ;;  %v1003_v5 = vmax.f32 %v995_v3, 0.0 }
 0x1cd   : > { %v1000_v6 = vadd.f32 %v1375_v61, %v925_v4  ;;  %1005 = vst [vmem:[%s434_s17] sm:$0xff] %v1003_v5 }
 0x1cf   : > { %v1004_v7 = vmax.f32 %v1000_v6, 0.0 }
 0x1d1   : > { %1006 = vst [vmem:[%s434_s17 + $0x8] sm:$0xff] %v1004_v7 }
 0x1d2 PF: > { %s17_s2 = sadd.s32 1, %s1424_s2   ;;  %s1795_s24 = smov %s1420_s1 }
 0x1d3   : > { %p14_p5 = scmp.ge.s32.totalorder %s17_s2, 4   ;;  %s1796_s1 = smov %s1798_s25 }
 0x1d5   :  { %16 = sbr.rel (!%p14_p5) target bundleno = 2 (0x2), region = 106 }

</bundles_post_ra>
